<compile_context>
chip_gen: v6e
topology: v6e:2x2x1
jax: 0.10.0
libtpu: 0.0.40
codegen_flags: <defaults>
</compile_context>

<pallas_src>
import jax
import jax.numpy as jnp
from jax import lax
from jax.experimental import pallas as pl
from jax.experimental.pallas import tpu as pltpu

# Synthetic config: encoder_type='lstm', rnn_num_layer=1, rnn_bidir=False, dropout=0.0
VOCAB = 50   # vocabulary size for the embedding
EMB   = 16   # emb_reader.embedding_dim -> rnn_input_size
HID   = 32   # config.rnn_cell_size      -> rnn_hid_size
B     = 2    # batch
T     = 8    # sequence length
B_PAD = max(8, -(-B // 8) * 8)   # batch padded to the 8-sublane boundary


def lstm_kernel(ids_ref, emb_gates_ref, w_hh_t_ref, mask_ref, out_ref):
    """Fused embedding + single-layer LSTM over time + masked lane-dense store.

    ids_ref      : (T*Bp, 1)   int32  token ids, time-major flattened (t, b)
    emb_gates_ref: (V, 4H)     f32    precomputed emb @ W_ih^T + (b_ih+b_hh),
                                      i/f/o columns pre-scaled by 0.5
    w_hh_t_ref   : (H, 4H)     bf16   W_hh^T, i/f/o columns pre-scaled by 0.5
    mask_ref     : (Bp, T*H)   f32    mask expanded along lanes (H copies per t)
    out_ref      : (Bp, T*H)   f32    masked hidden states, lane-dense
    """
    Bp, TH = out_ref.shape
    H = w_hh_t_ref.shape[0]
    Tn = TH // H
    V = emb_gates_ref.shape[0]

    w_hh_t = w_hh_t_ref[...]                                  # (H, 4H) bf16, loop-invariant

    # Fused embedding lookup + input projection + bias for ALL timesteps in one
    # MXU matmul.  one_hot rows have exactly one 1.0, so this is an exact row
    # select of the f32 table (no gather needed in-kernel or in the wrapper).
    ids = ids_ref[...]                                        # (T*Bp, 1) int32
    vocab_iota = lax.broadcasted_iota(jnp.int32, (Tn * Bp, V), 1)
    one_hot = (ids == vocab_iota).astype(jnp.float32)         # (T*Bp, V)
    gx_all = jnp.dot(one_hot, emb_gates_ref[...],
                     preferred_element_type=jnp.float32)      # (T*Bp, 4H), biased+pre-scaled

    # Per-lane affine applied AFTER the single tanh:
    #   i/f/o lanes: sigmoid(z) = 0.5*tanh(z/2) + 0.5   (the /2 is folded into
    #                the weights/table above, so no extra multiply on the chain)
    #   g lanes    : tanh(z)
    lane = lax.broadcasted_iota(jnp.int32, (1, 4 * H), 1)
    is_g = jnp.logical_and(lane >= 2 * H, lane < 3 * H)
    aff_a = jnp.where(is_g, jnp.float32(1.0), jnp.float32(0.5))   # (1, 4H)
    aff_b = jnp.where(is_g, jnp.float32(0.0), jnp.float32(0.5))   # (1, 4H)

    h = jnp.zeros((Bp, H), jnp.float32)
    c = jnp.zeros((Bp, H), jnp.float32)
    hs = []

    # Fully unrolled: t is a Python int, so every slice below is static and the
    # scheduler sees the whole recurrence.  Per-step serial chain: one MXU
    # matmul (loop-invariant bf16 RHS), one full-vreg tanh, one tanh(c), and a
    # handful of VPU ops.
    for t in range(Tn):
        gates = gx_all[t * Bp:(t + 1) * Bp, :] + jnp.dot(
            h.astype(w_hh_t.dtype), w_hh_t,
            preferred_element_type=jnp.float32)               # (Bp, 4H) f32 (pre-scaled)
        y = jnp.tanh(gates)                                   # single EUP pass over (Bp, 4H)
        act = y * aff_a + aff_b                               # i,f,o -> sigmoid ; g -> tanh
        i_g = act[:, 0 * H:1 * H]                             # PyTorch gate order i, f, g, o
        f_g = act[:, 1 * H:2 * H]
        g_g = act[:, 2 * H:3 * H]
        o_g = act[:, 3 * H:4 * H]
        c = f_g * c + i_g * g_g
        h = o_g * jnp.tanh(c)                                 # second (small) EUP pass
        hs.append(h)

    # One lane-dense full-width store: mask applied once, outside the loop.
    out_ref[...] = (jnp.concatenate(hs, axis=1) * mask_ref[...]).astype(out_ref.dtype)


def init_params(key):
    """Parameter init (shapes match nn.LSTM(E, H, 1, bias=True)) + all kernel-side
    weight preparation hoisted out of the per-call hot path."""
    k_emb, k1, k2, k3, k4 = jax.random.split(key, 5)
    bound = 1.0 / jnp.sqrt(jnp.float32(HID))
    emb  = jax.random.normal(k_emb, (VOCAB, EMB), jnp.float32) * 0.1
    w_ih = jax.random.uniform(k1, (4 * HID, EMB), jnp.float32, -bound, bound)
    w_hh = jax.random.uniform(k2, (4 * HID, HID), jnp.float32, -bound, bound)
    b_ih = jax.random.uniform(k3, (4 * HID,), jnp.float32, -bound, bound)
    b_hh = jax.random.uniform(k4, (4 * HID,), jnp.float32, -bound, bound)

    # Column pre-scale that implements sigmoid via a single tanh in-kernel:
    # 0.5 on the i/f/o gate columns, 1.0 on the g columns.
    col = jnp.arange(4 * HID)
    s_col = jnp.where((col >= 2 * HID) & (col < 3 * HID), 1.0, 0.5).astype(jnp.float32)

    # Fused token -> gate-preactivation table (embedding + input projection +
    # combined bias), pre-scaled.  Row v = (emb[v] @ W_ih^T + b_ih + b_hh) * s.
    emb_gates = (emb @ w_ih.T + (b_ih + b_hh)[None, :]) * s_col[None, :]   # (V, 4H) f32
    w_hh_t = (w_hh.T * s_col[None, :]).astype(jnp.bfloat16)                # (H, 4H) bf16

    return {
        # raw parameters (used only by the pure-JAX reference)
        "emb": emb, "w_ih": w_ih, "w_hh": w_hh, "b_ih": b_ih, "b_hh": b_hh,
        # kernel-ready precomputed parameters
        "emb_gates": emb_gates, "w_hh_t": w_hh_t,
    }


@jax.jit
def encoder_rnn_forward(params, text_inputs, mask_input, len_seq):
    """Mirrors Encoder_RNN.forward (lstm, 1 layer, unidirectional)."""
    del len_seq  # only used by PyTorch for the sort/unsort identity (see header)
    B_, T_ = text_inputs.shape
    pad_b = B_PAD - B_

    # Tiny integer glue: pad batch (pad rows get token 0, masked out below) and
    # flatten time-major so the kernel's per-step gx slice is contiguous.
    ids_tm = jnp.pad(text_inputs.astype(jnp.int32).T, ((0, 0), (0, pad_b)))   # (T, Bp)
    ids_tm = ids_tm.reshape(T_ * B_PAD, 1)

    # Mask, pre-expanded along lanes so the kernel masks with ONE multiply.
    mask = mask_input.reshape(B_, T_).astype(jnp.float32)
    mask_p = jnp.pad(mask, ((0, pad_b), (0, 0)))                              # (Bp, T)
    mask_exp = jnp.broadcast_to(mask_p[:, :, None],
                                (B_PAD, T_, HID)).reshape(B_PAD, T_ * HID)

    vmem = pl.BlockSpec(memory_space=pltpu.MemorySpace.VMEM)
    out = pl.pallas_call(
        lstm_kernel,
        out_shape=jax.ShapeDtypeStruct((B_PAD, T_ * HID), jnp.float32),
        in_specs=[vmem, vmem, vmem, vmem],
        out_specs=vmem,
    )(ids_tm, params["emb_gates"], params["w_hh_t"], mask_exp)

    # Free reshape (batch-major, contiguous) + drop batch padding.
    return out.reshape(B_PAD, T_, HID)[:B_]                                   # (B, T, H)


def _reference_forward(params, text_inputs, mask_input, len_seq):
    """Pure-JAX f32 reference (standard LSTM math, lax.scan) for correctness."""
    x = params["emb"][text_inputs].astype(jnp.float32)                        # (B, T, E)
    mask = mask_input.reshape(text_inputs.shape).astype(jnp.float32)
    w_ih_t = params["w_ih"].T
    w_hh_t = params["w_hh"].T
    b = params["b_ih"] + params["b_hh"]

    def step(carry, x_t):
        h, c = carry
        gates = x_t @ w_ih_t + h @ w_hh_t + b
        i = jax.nn.sigmoid(gates[:, 0 * HID:1 * HID])
        f = jax.nn.sigmoid(gates[:, 1 * HID:2 * HID])
        g = jnp.tanh(gates[:, 2 * HID:3 * HID])
        o = jax.nn.sigmoid(gates[:, 3 * HID:4 * HID])
        c = f * c + i * g
        h = o * jnp.tanh(c)
        return (h, c), h

    h0 = jnp.zeros((text_inputs.shape[0], HID), jnp.float32)
    _, hs = lax.scan(step, (h0, h0), jnp.transpose(x, (1, 0, 2)))
    out = jnp.transpose(hs, (1, 0, 2))                                        # (B, T, H)
    return out * mask[:, :, None]


if __name__ == "__main__":
    key = jax.random.PRNGKey(0)
    k_param, k_tok, k_len = jax.random.split(key, 3)

    params = init_params(k_param)

    text_inputs = jax.random.randint(k_tok, (B, T), 0, VOCAB, dtype=jnp.int32)
    len_seq = jax.random.randint(k_len, (B,), 1, T + 1, dtype=jnp.int32)
    # mask_input passed flat (B*T,) to mirror the .view(text_inputs.shape) call
    mask_2d = (jnp.arange(T)[None, :] < len_seq[:, None]).astype(jnp.float32)
    mask_input = mask_2d.reshape(-1)

    out = encoder_rnn_forward(params, text_inputs, mask_input, len_seq)
    out = jax.block_until_ready(out)

    ref = _reference_forward(params, text_inputs, mask_input, len_seq)
    assert out.shape == (B, T, HID), out.shape
    # bf16 recurrence operands (and tanh-based sigmoid) vs the pure-f32
    # reference -> loosened tolerance, same as the previously-validated version.
    err = float(jnp.max(jnp.abs(out - ref)))
    assert jnp.allclose(out, ref, atol=2e-2, rtol=2e-2), f"mismatch vs reference, max abs err {err}"

    # TODO(synk): bidirectional / multi-layer / GRU config variants and true
    # pack_padded_sequence final-state (h_n, c_n) semantics are not exercised
    # here (the synthetic config is lstm, 1 layer, unidirectional, and the
    # module discards final states); mask-after-the-fact only matches packing
    # for this case.  v7x dual-TC batch-grid sharding is also left out — at
    # B=2 a single call cannot use the second core.
    print("KERNEL_OK")
</pallas_src>

<mosaic_0001>
module attributes {stable_mosaic.version = 11 : i64} {
  func.func @lstm_kernel(%arg0: memref<64x1xi32, #tpu.memory_space<vmem>>, %arg1: memref<50x128xf32, #tpu.memory_space<vmem>>, %arg2: memref<32x128xbf16, #tpu.memory_space<vmem>>, %arg3: memref<8x256xf32, #tpu.memory_space<vmem>>, %arg4: memref<8x256xf32, #tpu.memory_space<vmem>>) attributes {dimension_semantics = [], scalar_prefetch = 0 : i64, scratch_operands = 0 : i64, tpu.core_type = #tpu.core_type<tc>} {
    %c0 = arith.constant 0 : index
    %c0_0 = arith.constant 0 : index
    %0 = vector.load %arg2[%c0, %c0_0] : memref<32x128xbf16, #tpu.memory_space<vmem>>, vector<32x128xbf16>
    %c0_1 = arith.constant 0 : index
    %c0_2 = arith.constant 0 : index
    %1 = vector.load %arg0[%c0_1, %c0_2] : memref<64x1xi32, #tpu.memory_space<vmem>>, vector<64x1xi32>
    %2 = tpu.iota {dimensions = array<i32: 1>} : vector<64x50xi32>
    %3 = vector.broadcast %1 : vector<64x1xi32> to vector<64x50xi32>
    %4 = arith.cmpi eq, %3, %2 : vector<64x50xi32>
    %5 = arith.extui %4 : vector<64x50xi1> to vector<64x50xi32>
    %6 = arith.sitofp %5 : vector<64x50xi32> to vector<64x50xf32>
    %c0_3 = arith.constant 0 : index
    %c0_4 = arith.constant 0 : index
    %7 = vector.load %arg1[%c0_3, %c0_4] : memref<50x128xf32, #tpu.memory_space<vmem>>, vector<50x128xf32>
    %cst = arith.constant dense<0.000000e+00> : vector<64x128xf32>
    %8 = tpu.matmul %6, %7, %cst {dimension_numbers = #tpu.dot_dimension_numbers<[1], [0], [0], [1], [0, 0, 1, 1], [], []>} : vector<64x50xf32>, vector<50x128xf32>, vector<64x128xf32> -> vector<64x128xf32>
    %9 = tpu.iota {dimensions = array<i32: 1>} : vector<1x128xi32>
    %c64_i32 = arith.constant 64 : i32
    %10 = vector.broadcast %c64_i32 : i32 to vector<1x128xi32>
    %11 = arith.cmpi sge, %9, %10 : vector<1x128xi32>
    %c96_i32 = arith.constant 96 : i32
    %12 = vector.broadcast %c96_i32 : i32 to vector<1x128xi32>
    %13 = arith.cmpi slt, %9, %12 : vector<1x128xi32>
    %14 = arith.andi %11, %13 : vector<1x128xi1>
    %cst_5 = arith.constant 1.000000e+00 : f32
    %cst_6 = arith.constant 5.000000e-01 : f32
    %15 = vector.broadcast %cst_5 : f32 to vector<1x128xf32>
    %16 = vector.broadcast %cst_6 : f32 to vector<1x128xf32>
    %17 = arith.select %14, %15, %16 : vector<1x128xi1>, vector<1x128xf32>
    %cst_7 = arith.constant 0.000000e+00 : f32
    %cst_8 = arith.constant 5.000000e-01 : f32
    %18 = vector.broadcast %cst_7 : f32 to vector<1x128xf32>
    %19 = vector.broadcast %cst_8 : f32 to vector<1x128xf32>
    %20 = arith.select %14, %18, %19 : vector<1x128xi1>, vector<1x128xf32>
    %cst_9 = arith.constant 0.000000e+00 : f32
    %21 = vector.broadcast %cst_9 : f32 to vector<8x32xf32>
    %cst_10 = arith.constant 0.000000e+00 : f32
    %22 = vector.broadcast %cst_10 : f32 to vector<8x32xf32>
    %23 = vector.extract_strided_slice %8 {offsets = [0, 0], sizes = [8, 128], strides = [1, 1]} : vector<64x128xf32> to vector<8x128xf32>
    %24 = arith.truncf %21 : vector<8x32xf32> to vector<8x32xbf16>
    %cst_11 = arith.constant dense<0.000000e+00> : vector<8x128xf32>
    %25 = tpu.matmul %24, %0, %cst_11 {dimension_numbers = #tpu.dot_dimension_numbers<[1], [0], [0], [1], [0, 0, 1, 1], [], []>} : vector<8x32xbf16>, vector<32x128xbf16>, vector<8x128xf32> -> vector<8x128xf32>
    %26 = arith.addf %23, %25 : vector<8x128xf32>
    %27 = math.tanh %26 : vector<8x128xf32>
    %28 = vector.broadcast %17 : vector<1x128xf32> to vector<8x128xf32>
    %29 = arith.mulf %27, %28 : vector<8x128xf32>
    %30 = vector.broadcast %20 : vector<1x128xf32> to vector<8x128xf32>
    %31 = arith.addf %29, %30 : vector<8x128xf32>
    %32 = vector.extract_strided_slice %31 {offsets = [0, 0], sizes = [8, 32], strides = [1, 1]} : vector<8x128xf32> to vector<8x32xf32>
    %33 = vector.extract_strided_slice %31 {offsets = [0, 32], sizes = [8, 32], strides = [1, 1]} : vector<8x128xf32> to vector<8x32xf32>
    %34 = vector.extract_strided_slice %31 {offsets = [0, 64], sizes = [8, 32], strides = [1, 1]} : vector<8x128xf32> to vector<8x32xf32>
    %35 = vector.extract_strided_slice %31 {offsets = [0, 96], sizes = [8, 32], strides = [1, 1]} : vector<8x128xf32> to vector<8x32xf32>
    %36 = arith.mulf %33, %22 : vector<8x32xf32>
    %37 = arith.mulf %32, %34 : vector<8x32xf32>
    %38 = arith.addf %36, %37 : vector<8x32xf32>
    %39 = math.tanh %38 : vector<8x32xf32>
    %40 = arith.mulf %35, %39 : vector<8x32xf32>
    %41 = vector.extract_strided_slice %8 {offsets = [8, 0], sizes = [8, 128], strides = [1, 1]} : vector<64x128xf32> to vector<8x128xf32>
    %42 = arith.truncf %40 : vector<8x32xf32> to vector<8x32xbf16>
    %cst_12 = arith.constant dense<0.000000e+00> : vector<8x128xf32>
    %43 = tpu.matmul %42, %0, %cst_12 {dimension_numbers = #tpu.dot_dimension_numbers<[1], [0], [0], [1], [0, 0, 1, 1], [], []>} : vector<8x32xbf16>, vector<32x128xbf16>, vector<8x128xf32> -> vector<8x128xf32>
    %44 = arith.addf %41, %43 : vector<8x128xf32>
    %45 = math.tanh %44 : vector<8x128xf32>
    %46 = vector.broadcast %17 : vector<1x128xf32> to vector<8x128xf32>
    %47 = arith.mulf %45, %46 : vector<8x128xf32>
    %48 = vector.broadcast %20 : vector<1x128xf32> to vector<8x128xf32>
    %49 = arith.addf %47, %48 : vector<8x128xf32>
    %50 = vector.extract_strided_slice %49 {offsets = [0, 0], sizes = [8, 32], strides = [1, 1]} : vector<8x128xf32> to vector<8x32xf32>
    %51 = vector.extract_strided_slice %49 {offsets = [0, 32], sizes = [8, 32], strides = [1, 1]} : vector<8x128xf32> to vector<8x32xf32>
    %52 = vector.extract_strided_slice %49 {offsets = [0, 64], sizes = [8, 32], strides = [1, 1]} : vector<8x128xf32> to vector<8x32xf32>
    %53 = vector.extract_strided_slice %49 {offsets = [0, 96], sizes = [8, 32], strides = [1, 1]} : vector<8x128xf32> to vector<8x32xf32>
    %54 = arith.mulf %51, %38 : vector<8x32xf32>
    %55 = arith.mulf %50, %52 : vector<8x32xf32>
    %56 = arith.addf %54, %55 : vector<8x32xf32>
    %57 = math.tanh %56 : vector<8x32xf32>
    %58 = arith.mulf %53, %57 : vector<8x32xf32>
    %59 = vector.extract_strided_slice %8 {offsets = [16, 0], sizes = [8, 128], strides = [1, 1]} : vector<64x128xf32> to vector<8x128xf32>
    %60 = arith.truncf %58 : vector<8x32xf32> to vector<8x32xbf16>
    %cst_13 = arith.constant dense<0.000000e+00> : vector<8x128xf32>
    %61 = tpu.matmul %60, %0, %cst_13 {dimension_numbers = #tpu.dot_dimension_numbers<[1], [0], [0], [1], [0, 0, 1, 1], [], []>} : vector<8x32xbf16>, vector<32x128xbf16>, vector<8x128xf32> -> vector<8x128xf32>
    %62 = arith.addf %59, %61 : vector<8x128xf32>
    %63 = math.tanh %62 : vector<8x128xf32>
    %64 = vector.broadcast %17 : vector<1x128xf32> to vector<8x128xf32>
    %65 = arith.mulf %63, %64 : vector<8x128xf32>
    %66 = vector.broadcast %20 : vector<1x128xf32> to vector<8x128xf32>
    %67 = arith.addf %65, %66 : vector<8x128xf32>
    %68 = vector.extract_strided_slice %67 {offsets = [0, 0], sizes = [8, 32], strides = [1, 1]} : vector<8x128xf32> to vector<8x32xf32>
    %69 = vector.extract_strided_slice %67 {offsets = [0, 32], sizes = [8, 32], strides = [1, 1]} : vector<8x128xf32> to vector<8x32xf32>
    %70 = vector.extract_strided_slice %67 {offsets = [0, 64], sizes = [8, 32], strides = [1, 1]} : vector<8x128xf32> to vector<8x32xf32>
    %71 = vector.extract_strided_slice %67 {offsets = [0, 96], sizes = [8, 32], strides = [1, 1]} : vector<8x128xf32> to vector<8x32xf32>
    %72 = arith.mulf %69, %56 : vector<8x32xf32>
    %73 = arith.mulf %68, %70 : vector<8x32xf32>
    %74 = arith.addf %72, %73 : vector<8x32xf32>
    %75 = math.tanh %74 : vector<8x32xf32>
    %76 = arith.mulf %71, %75 : vector<8x32xf32>
    %77 = vector.extract_strided_slice %8 {offsets = [24, 0], sizes = [8, 128], strides = [1, 1]} : vector<64x128xf32> to vector<8x128xf32>
    %78 = arith.truncf %76 : vector<8x32xf32> to vector<8x32xbf16>
    %cst_14 = arith.constant dense<0.000000e+00> : vector<8x128xf32>
    %79 = tpu.matmul %78, %0, %cst_14 {dimension_numbers = #tpu.dot_dimension_numbers<[1], [0], [0], [1], [0, 0, 1, 1], [], []>} : vector<8x32xbf16>, vector<32x128xbf16>, vector<8x128xf32> -> vector<8x128xf32>
    %80 = arith.addf %77, %79 : vector<8x128xf32>
    %81 = math.tanh %80 : vector<8x128xf32>
    %82 = vector.broadcast %17 : vector<1x128xf32> to vector<8x128xf32>
    %83 = arith.mulf %81, %82 : vector<8x128xf32>
    %84 = vector.broadcast %20 : vector<1x128xf32> to vector<8x128xf32>
    %85 = arith.addf %83, %84 : vector<8x128xf32>
    %86 = vector.extract_strided_slice %85 {offsets = [0, 0], sizes = [8, 32], strides = [1, 1]} : vector<8x128xf32> to vector<8x32xf32>
    %87 = vector.extract_strided_slice %85 {offsets = [0, 32], sizes = [8, 32], strides = [1, 1]} : vector<8x128xf32> to vector<8x32xf32>
    %88 = vector.extract_strided_slice %85 {offsets = [0, 64], sizes = [8, 32], strides = [1, 1]} : vector<8x128xf32> to vector<8x32xf32>
    %89 = vector.extract_strided_slice %85 {offsets = [0, 96], sizes = [8, 32], strides = [1, 1]} : vector<8x128xf32> to vector<8x32xf32>
    %90 = arith.mulf %87, %74 : vector<8x32xf32>
    %91 = arith.mulf %86, %88 : vector<8x32xf32>
    %92 = arith.addf %90, %91 : vector<8x32xf32>
    %93 = math.tanh %92 : vector<8x32xf32>
    %94 = arith.mulf %89, %93 : vector<8x32xf32>
    %95 = vector.extract_strided_slice %8 {offsets = [32, 0], sizes = [8, 128], strides = [1, 1]} : vector<64x128xf32> to vector<8x128xf32>
    %96 = arith.truncf %94 : vector<8x32xf32> to vector<8x32xbf16>
    %cst_15 = arith.constant dense<0.000000e+00> : vector<8x128xf32>
    %97 = tpu.matmul %96, %0, %cst_15 {dimension_numbers = #tpu.dot_dimension_numbers<[1], [0], [0], [1], [0, 0, 1, 1], [], []>} : vector<8x32xbf16>, vector<32x128xbf16>, vector<8x128xf32> -> vector<8x128xf32>
    %98 = arith.addf %95, %97 : vector<8x128xf32>
    %99 = math.tanh %98 : vector<8x128xf32>
    %100 = vector.broadcast %17 : vector<1x128xf32> to vector<8x128xf32>
    %101 = arith.mulf %99, %100 : vector<8x128xf32>
    %102 = vector.broadcast %20 : vector<1x128xf32> to vector<8x128xf32>
    %103 = arith.addf %101, %102 : vector<8x128xf32>
    %104 = vector.extract_strided_slice %103 {offsets = [0, 0], sizes = [8, 32], strides = [1, 1]} : vector<8x128xf32> to vector<8x32xf32>
    %105 = vector.extract_strided_slice %103 {offsets = [0, 32], sizes = [8, 32], strides = [1, 1]} : vector<8x128xf32> to vector<8x32xf32>
    %106 = vector.extract_strided_slice %103 {offsets = [0, 64], sizes = [8, 32], strides = [1, 1]} : vector<8x128xf32> to vector<8x32xf32>
    %107 = vector.extract_strided_slice %103 {offsets = [0, 96], sizes = [8, 32], strides = [1, 1]} : vector<8x128xf32> to vector<8x32xf32>
    %108 = arith.mulf %105, %92 : vector<8x32xf32>
    %109 = arith.mulf %104, %106 : vector<8x32xf32>
    %110 = arith.addf %108, %109 : vector<8x32xf32>
    %111 = math.tanh %110 : vector<8x32xf32>
    %112 = arith.mulf %107, %111 : vector<8x32xf32>
    %113 = vector.extract_strided_slice %8 {offsets = [40, 0], sizes = [8, 128], strides = [1, 1]} : vector<64x128xf32> to vector<8x128xf32>
    %114 = arith.truncf %112 : vector<8x32xf32> to vector<8x32xbf16>
    %cst_16 = arith.constant dense<0.000000e+00> : vector<8x128xf32>
    %115 = tpu.matmul %114, %0, %cst_16 {dimension_numbers = #tpu.dot_dimension_numbers<[1], [0], [0], [1], [0, 0, 1, 1], [], []>} : vector<8x32xbf16>, vector<32x128xbf16>, vector<8x128xf32> -> vector<8x128xf32>
    %116 = arith.addf %113, %115 : vector<8x128xf32>
    %117 = math.tanh %116 : vector<8x128xf32>
    %118 = vector.broadcast %17 : vector<1x128xf32> to vector<8x128xf32>
    %119 = arith.mulf %117, %118 : vector<8x128xf32>
    %120 = vector.broadcast %20 : vector<1x128xf32> to vector<8x128xf32>
    %121 = arith.addf %119, %120 : vector<8x128xf32>
    %122 = vector.extract_strided_slice %121 {offsets = [0, 0], sizes = [8, 32], strides = [1, 1]} : vector<8x128xf32> to vector<8x32xf32>
    %123 = vector.extract_strided_slice %121 {offsets = [0, 32], sizes = [8, 32], strides = [1, 1]} : vector<8x128xf32> to vector<8x32xf32>
    %124 = vector.extract_strided_slice %121 {offsets = [0, 64], sizes = [8, 32], strides = [1, 1]} : vector<8x128xf32> to vector<8x32xf32>
    %125 = vector.extract_strided_slice %121 {offsets = [0, 96], sizes = [8, 32], strides = [1, 1]} : vector<8x128xf32> to vector<8x32xf32>
    %126 = arith.mulf %123, %110 : vector<8x32xf32>
    %127 = arith.mulf %122, %124 : vector<8x32xf32>
    %128 = arith.addf %126, %127 : vector<8x32xf32>
    %129 = math.tanh %128 : vector<8x32xf32>
    %130 = arith.mulf %125, %129 : vector<8x32xf32>
    %131 = vector.extract_strided_slice %8 {offsets = [48, 0], sizes = [8, 128], strides = [1, 1]} : vector<64x128xf32> to vector<8x128xf32>
    %132 = arith.truncf %130 : vector<8x32xf32> to vector<8x32xbf16>
    %cst_17 = arith.constant dense<0.000000e+00> : vector<8x128xf32>
    %133 = tpu.matmul %132, %0, %cst_17 {dimension_numbers = #tpu.dot_dimension_numbers<[1], [0], [0], [1], [0, 0, 1, 1], [], []>} : vector<8x32xbf16>, vector<32x128xbf16>, vector<8x128xf32> -> vector<8x128xf32>
    %134 = arith.addf %131, %133 : vector<8x128xf32>
    %135 = math.tanh %134 : vector<8x128xf32>
    %136 = vector.broadcast %17 : vector<1x128xf32> to vector<8x128xf32>
    %137 = arith.mulf %135, %136 : vector<8x128xf32>
    %138 = vector.broadcast %20 : vector<1x128xf32> to vector<8x128xf32>
    %139 = arith.addf %137, %138 : vector<8x128xf32>
    %140 = vector.extract_strided_slice %139 {offsets = [0, 0], sizes = [8, 32], strides = [1, 1]} : vector<8x128xf32> to vector<8x32xf32>
    %141 = vector.extract_strided_slice %139 {offsets = [0, 32], sizes = [8, 32], strides = [1, 1]} : vector<8x128xf32> to vector<8x32xf32>
    %142 = vector.extract_strided_slice %139 {offsets = [0, 64], sizes = [8, 32], strides = [1, 1]} : vector<8x128xf32> to vector<8x32xf32>
    %143 = vector.extract_strided_slice %139 {offsets = [0, 96], sizes = [8, 32], strides = [1, 1]} : vector<8x128xf32> to vector<8x32xf32>
    %144 = arith.mulf %141, %128 : vector<8x32xf32>
    %145 = arith.mulf %140, %142 : vector<8x32xf32>
    %146 = arith.addf %144, %145 : vector<8x32xf32>
    %147 = math.tanh %146 : vector<8x32xf32>
    %148 = arith.mulf %143, %147 : vector<8x32xf32>
    %149 = vector.extract_strided_slice %8 {offsets = [56, 0], sizes = [8, 128], strides = [1, 1]} : vector<64x128xf32> to vector<8x128xf32>
    %150 = arith.truncf %148 : vector<8x32xf32> to vector<8x32xbf16>
    %cst_18 = arith.constant dense<0.000000e+00> : vector<8x128xf32>
    %151 = tpu.matmul %150, %0, %cst_18 {dimension_numbers = #tpu.dot_dimension_numbers<[1], [0], [0], [1], [0, 0, 1, 1], [], []>} : vector<8x32xbf16>, vector<32x128xbf16>, vector<8x128xf32> -> vector<8x128xf32>
    %152 = arith.addf %149, %151 : vector<8x128xf32>
    %153 = math.tanh %152 : vector<8x128xf32>
    %154 = vector.broadcast %17 : vector<1x128xf32> to vector<8x128xf32>
    %155 = arith.mulf %153, %154 : vector<8x128xf32>
    %156 = vector.broadcast %20 : vector<1x128xf32> to vector<8x128xf32>
    %157 = arith.addf %155, %156 : vector<8x128xf32>
    %158 = vector.extract_strided_slice %157 {offsets = [0, 0], sizes = [8, 32], strides = [1, 1]} : vector<8x128xf32> to vector<8x32xf32>
    %159 = vector.extract_strided_slice %157 {offsets = [0, 32], sizes = [8, 32], strides = [1, 1]} : vector<8x128xf32> to vector<8x32xf32>
    %160 = vector.extract_strided_slice %157 {offsets = [0, 64], sizes = [8, 32], strides = [1, 1]} : vector<8x128xf32> to vector<8x32xf32>
    %161 = vector.extract_strided_slice %157 {offsets = [0, 96], sizes = [8, 32], strides = [1, 1]} : vector<8x128xf32> to vector<8x32xf32>
    %162 = arith.mulf %159, %146 : vector<8x32xf32>
    %163 = arith.mulf %158, %160 : vector<8x32xf32>
    %164 = arith.addf %162, %163 : vector<8x32xf32>
    %165 = math.tanh %164 : vector<8x32xf32>
    %166 = arith.mulf %161, %165 : vector<8x32xf32>
    %167 = tpu.concatenate %40, %58, %76, %94, %112, %130, %148, %166 in 1 : vector<8x32xf32>, vector<8x32xf32>, vector<8x32xf32>, vector<8x32xf32>, vector<8x32xf32>, vector<8x32xf32>, vector<8x32xf32>, vector<8x32xf32> -> vector<8x256xf32>
    %c0_19 = arith.constant 0 : index
    %c0_20 = arith.constant 0 : index
    %168 = vector.load %arg3[%c0_19, %c0_20] : memref<8x256xf32, #tpu.memory_space<vmem>>, vector<8x256xf32>
    %169 = arith.mulf %167, %168 : vector<8x256xf32>
    %c0_21 = arith.constant 0 : index
    %c0_22 = arith.constant 0 : index
    %170 = vector.load %arg4[%c0_21, %c0_22] : memref<8x256xf32, #tpu.memory_space<vmem>>, vector<8x256xf32>
    tpu.vector_store %arg4[%c0_21, %c0_22], %169 {strides = array<i32>} : memref<8x256xf32, #tpu.memory_space<vmem>>, vector<8x256xf32>,
    return
  }
}

</mosaic_0001>

<bundles_post_ra>
// kernel: encoder_rnn_forward.1
= control target key start
LH: loop header
LB: loop body
LE: loop exit
PB: predicated region body
PF: predicated region fallthrough
CT: control target
= control target key end

     0   :  { %vm112_vm0 = vcmask 1041408   ;;  %v1019_v0 = vmov 0   ;;  %v1020_v3 = vmov 0.0   ;;  %vm1021_vm1 = vmmov 0   ;;  %s1024_s10 = smov 32   ;;  %s1296_s0 = inlined_call_operand.vmem [shape: s32[64,1], index: 0, kind: input, shape index: {}]   ;;  %s1297_s1 = inlined_call_operand.vmem [shape: f32[50,128], index: 1, kind: input, shape index: {}]   ;;  %s1298_s2 = inlined_call_operand.vmem [shape: bf16[32,128], index: 2, kind: input, shape index: {}]   ;;  %s1299_s3 = inlined_call_operand.vmem [shape: f32[8,256], index: 3, kind: input, shape index: {}]   ;;  %s1300_s4 = inlined_call_operand.vmem [shape: f32[8,256], index: 4, kind: output, shape index: {}]  }
   0x1   :  { %983 = vset.pattern.permute.xlu0 %v1019_v0  ;;  %v22_v1 = vld [vmem:[%s1296_s0] sm:$0xff]  ;;  %v86_v2 = vld [vmem:[%s1297_s1 + $0x30] sm:$0x3]  ;;  %912 = vmatprep.subr.bf16.mxu1 %v1020_v3  ;;  %v85_v4 = vld [vmem:[%s1297_s1 + $0x28] sm:$0xff]  ;;  %v30_v13 = vlaneseq  ;;  %vm87_vm2 = vcmask 408576   ;;  %v1022_v26 = vmov 0.5  }
   0x2   :  { %33 = vperm.xlu0 %983, %v22_v1   ;;  %886 = vmatprep.subr.msk.mxu0 %vm112_vm0, %v86_v2  ;;  %v23_v5 = vld [vmem:[%s1296_s0 + $0x8] sm:$0xff]  ;;  %v84_v7 = vld [vmem:[%s1297_s1 + $0x20] sm:$0xff]  ;;  %v83_v8 = vld [vmem:[%s1297_s1 + $0x18] sm:$0xff]  ;;  %vm238_vm8 = vcmask 261120   ;;  %vm804_vm15 = vcmask 523264  }
   0x3   :  { %887 = vmatpush3.msk.msra.mxu0 %vm112_vm0, %v86_v2  ;;  %v1067_v6 = vld [vmem:[%s1298_s2 + $0x8] sm:$0xff]   ;;  %916 = vmatprep.mubr.msk.bf16.mxu1 %vm1021_vm1, %v1020_v3  ;;  %v1081_v9 = vld [vmem:[%s1298_s2] sm:$0xff]   ;;  %v82_v10 = vld [vmem:[%s1297_s1 + $0x10] sm:$0xff]  ;;  %v1102_v14 = vand.u32 127, %v30_v13  ;;  %vm806_vm0 = vcmask 785408  }
   0x4   :  { %888 = vmatprep.subr.mxu0 %v85_v4  ;;  %984 = vset.pattern.permute.xlu1 %v1019_v0  ;;  %v81_v11 = vld [vmem:[%s1297_s1 + $0x8] sm:$0xff]  ;;  %v80_v12 = vld [vmem:[%s1297_s1] sm:$0xff]  ;;  %s1023_s1 = smov 64   ;;  %v24_v52 = vld [vmem:[%s1296_s0 + $0x10] sm:$0xff] }
   0x5   :  { %889 = vmatpush3.msra.mxu0 %v85_v4  ;;  %913 = vmatpush3.bf16.msra.mxu1 %v1067_v6  ;;  %vm221_vm5 = vcmp.ge.s32.totalorder %v1102_v14, 64  ;;  %vm222_vm6 = vcmp.lt.s32.totalorder %v1102_v14, 96  ;;  %v25_v59 = vld [vmem:[%s1296_s0 + $0x18] sm:$0xff] }
   0x6   :  { %36 = vperm.xlu0 %983, %v23_v5   ;;  %890 = vmatprep.subr.mxu0 %v84_v7  ;;  %vm223_vm7 = vmand %vm221_vm5, %vm222_vm6 }
   0x7   :  { %891 = vmatpush3.msra.mxu0 %v84_v7  ;;  %914 = vmatprep.subr.bf16.mxu1 %v1020_v3  ;;  %v1116_v27 = vsel %vm223_vm7, 1.0, %v1022_v26  ;;  %v1118_v29 = vsel %vm223_vm7, 0.0, %v1022_v26  ;;  %v27_v26 = vld [vmem:[%s1296_s0 + $0x28] sm:$0xff] }
   0x8   :  { %892 = vmatprep.subr.mxu0 %v83_v8 }
   0x9   :  { %893 = vmatpush3.msra.mxu0 %v83_v8  ;;  %915 = vmatpush3.bf16.msra.mxu1 %v1081_v9 }
   0xa   :  { %894 = vmatprep.subr.mxu0 %v82_v10  ;;  %920 = vmatprep.subr.bf16.mxu1 %v1020_v3 }
   0xb   :  { %895 = vmatpush3.msra.mxu0 %v82_v10 }
   0xc   :  { %896 = vmatprep.subr.mxu0 %v81_v11  ;;  %917 = vmatmul.mubr.bf16.vlgmr.msra.gmra.mxu1 %v1019_v0 }
   0xd   :  { %897 = vmatpush3.msra.mxu0 %v81_v11  ;;  %921 = vmatpush3.bf16.msra.mxu1 %v1067_v6 }
   0xe   :  { %898 = vmatprep.subr.mxu0 %v80_v12  ;;  %922 = vmatprep.subr.bf16.mxu1 %v1020_v3 }
   0xf   :  { %899 = vmatpush3.msra.mxu0 %v80_v12  ;;  %924 = vmatprep.mubr.msk.bf16.mxu1 %vm1021_vm1, %v1020_v3 }
  0x10   :  { %936 = vmatprep.subr.bf16.mxu0 %v1020_v3 }
  0x11   :  { %923 = vmatpush3.bf16.msra.mxu1 %v1081_v9 }
  0x12   :  { %928 = vmatprep.subr.bf16.mxu1 %v1020_v3 }
  0x7d   :  { %v34_v15 = vpop.permute.xlu0 %33 }
  0x7e   :  { %vm56_vm3 = vcmp.eq.s32.totalorder %v34_v15, %v1102_v14 }
  0x7f   :  { %v821_v16 = vsel %vm56_vm3, 1.0, %v1020_v3 }
  0x80   :  { %900 = vmatprep.mubr.msk.f32.mxu0 %vm87_vm2, %v821_v16 }
  0x81   :  { %v37_v17 = vpop.permute.xlu0 %36 }
  0x82   :  { %vm57_vm4 = vcmp.eq.s32.totalorder %v37_v17, %v1102_v14 }
  0x83   :  { %v822_v18 = vsel %vm57_vm4, 1.0, %v1020_v3 }
  0x84   :  { %901 = vmatmul.mubr.msk.f32.vlgmr.msra.gmra.mxu0 %vm87_vm2, %v822_v18  ;;  %v26_v18 = vld [vmem:[%s1296_s0 + $0x20] sm:$0xff] }
  0x85   :  { %937 = vmatpush3.bf16.msra.mxu0 %v1067_v6 }
  0x86   :  { %938 = vmatprep.subr.bf16.mxu0 %v1020_v3 }
  0x89   :  { %939 = vmatpush3.bf16.msra.mxu0 %v1081_v9 }
  0x8a   :  { %952 = vmatprep.subr.bf16.mxu0 %v1020_v3 }
  0xcc   :  { %v276_v19 = vpop.f32.mrf.mxu1 }
  0xce   :  { %v918_v20 = vpop.f32.mrf.mxu1 }
  0xd0   :  { %v279_v21 = vpop.f32.mrf.mxu1 }
  0xd2   :  { %v919_v22 = vpop.f32.mrf.mxu1 }
 0x144   :  { %v902_v23 = vpop.f32.mrf.mxu0 }
 0x146   :  { %v182_v24 = vpop.f32.mrf.mxu0 }
 0x147   :  { %v282_v25 = vadd.f32 %v276_v19, %v182_v24  ;;  %v28_v19 = vld [vmem:[%s1296_s0 + $0x30] sm:$0xff] }
 0x149   :  { %987 = vtanh.f32 %v282_v25 }
 0x156   :  { %v988_v28 = vpop.eup %987 }
 0x157   :  { %v284_v30 = vmul.f32 %v988_v28, %v1116_v27  ;;  %v29_v28 = vld [vmem:[%s1296_s0 + $0x38] sm:$0xff]  ;;  %s1025_s0 = smov 96  }
 0x159   :  { %v285_v31 = vadd.f32 %v284_v30, %v1118_v29 }
 0x15b   :  { %288 = vrot.lane.b32.xlu1 %v285_v31, %s1023_s1  ;;  %v286_v34 = vmul.f32 0.0, %v285_v31 }
 0x1cd   :  { %v289_v32 = vpop.permute.xlu1 %288 }
 0x1ce   :  { %v291_v33 = vmul.f32 %v289_v32, %v285_v31 }
 0x1d0   :  { %293 = vrot.lane.b32.xlu1 %v291_v33, %s1024_s10 }
 0x242   :  { %v294_v35 = vpop.permute.xlu1 %293 }
 0x243   :  { %v296_v36 = vadd.f32 %v294_v35, %v286_v34 }
 0x245   :  { %989 = vtanh.f32 %v296_v36 }
 0x252   :  { %v990_v37 = vpop.eup %989 }
 0x253   :  { %299 = vrot.lane.b32.xlu0 %v990_v37, %s1023_s1 }
 0x2c5   :  { %v300_v38 = vpop.permute.xlu0 %299 }
 0x2c6   :  { %v1125_v39 = vmul.f32 %v300_v38, %v285_v31 }
 0x2c8   :  { %v303_v40 = vpack.c.bf16 %v1125_v39, %v1125_v39 }
 0x2ca   :  { %305 = vrot.lane.b32.xlu1 %v303_v40, %s1024_s10 }
 0x33c   :  { %v306_v41 = vpop.permute.xlu1 %305 }
 0x33d   :  { %925 = vmatmul.mubr.msk.bf16.vlgmr.msra.gmra.mxu1 %vm238_vm8, %v306_v41 }
 0x33e   :  { %929 = vmatpush3.bf16.msra.mxu1 %v1067_v6  ;;  %932 = vmatprep.mubr.msk.bf16.mxu1 %vm1021_vm1, %v1020_v3 }
 0x33f   :  { %930 = vmatprep.subr.bf16.mxu1 %v1020_v3 }
 0x342   :  { %931 = vmatpush3.bf16.msra.mxu1 %v1081_v9 }
 0x343   :  { %944 = vmatprep.subr.bf16.mxu1 %v1020_v3 }
 0x3fd   :  { %v344_v42 = vpop.f32.mrf.mxu1 }
 0x3fe   :  { %v350_v43 = vadd.f32 %v902_v23, %v344_v42 }
 0x3ff   :  { %v926_v44 = vpop.f32.mrf.mxu1 }
 0x400   :  { %991 = vtanh.f32 %v350_v43 }
 0x401   :  { %v347_v45 = vpop.f32.mrf.mxu1 }
 0x403   :  { %v927_v46 = vpop.f32.mrf.mxu1 }
 0x40d   :  { %v992_v47 = vpop.eup %991 }
 0x40e   :  { %v352_v48 = vmul.f32 %v992_v47, %v1116_v27 }
 0x410   :  { %v353_v49 = vadd.f32 %v352_v48, %v1118_v29 }
 0x412   :  { %356 = vrot.lane.b32.xlu0 %v353_v49, %s1023_s1  ;;  %v354_v53 = vmul.f32 %v353_v49, %v296_v36 }
 0x484   :  { %v357_v50 = vpop.permute.xlu0 %356 }
 0x485   :  { %v359_v51 = vmul.f32 %v357_v50, %v353_v49 }
 0x487   :  { %361 = vrot.lane.b32.xlu1 %v359_v51, %s1024_s10 }
 0x48b   :  { %39 = vperm.xlu1 %984, %v24_v52  }
 0x4f9   :  { %v362_v54 = vpop.permute.xlu1 %361 }
 0x4fa   :  { %v364_v55 = vadd.f32 %v362_v54, %v354_v53 }
 0x4fc   :  { %993 = vtanh.f32 %v364_v55 }
 0x506   :  { %v40_v56 = vpop.permute.xlu1 %39 }
 0x507   :  { %vm58_vm9 = vcmp.eq.s32.totalorder %v40_v56, %v1102_v14 }
 0x508   :  { %v823_v57 = vsel %vm58_vm9, 1.0, %v1020_v3 }
 0x509   :  { %v994_v58 = vpop.eup %993  ;;  %903 = vmatprep.mubr.msk.f32.mxu0 %vm87_vm2, %v823_v57 }
 0x50a   :  { %367 = vrot.lane.b32.xlu0 %v994_v58, %s1023_s1 }
 0x50e   :  { %42 = vperm.xlu0 %983, %v25_v59  }
 0x57c   :  { %v368_v60 = vpop.permute.xlu0 %367 }
 0x57d   :  { %v1151_v61 = vmul.f32 %v368_v60, %v353_v49 }
 0x57f   :  { %v371_v62 = vpack.c.bf16 %v1151_v61, %v1151_v61 }
 0x581   :  { %373 = vrot.lane.b32.xlu1 %v371_v62, %s1024_s10 }
 0x589   :  { %v43_v63 = vpop.permute.xlu0 %42 }
 0x58a   :  { %vm59_vm10 = vcmp.eq.s32.totalorder %v43_v63, %v1102_v14 }
 0x58b   :  { %v824_v0 = vsel %vm59_vm10, 1.0, %v1020_v3 }
 0x58c   :  { %904 = vmatmul.mubr.msk.f32.gmra.mxu0 %vm87_vm2, %v824_v0 }
 0x5f3   :  { %v374_v1 = vpop.permute.xlu1 %373 }
 0x5f4   :  { %933 = vmatmul.mubr.msk.bf16.vlgmr.msra.gmra.mxu1 %vm238_vm8, %v374_v1 }
 0x5f5   :  { %945 = vmatpush3.bf16.msra.mxu1 %v1067_v6  ;;  %948 = vmatprep.mubr.msk.bf16.mxu1 %vm1021_vm1, %v1020_v3 }
 0x5f6   :  { %946 = vmatprep.subr.bf16.mxu1 %v1020_v3 }
 0x5f9   :  { %947 = vmatpush3.bf16.msra.mxu1 %v1081_v9 }
 0x5fa   :  { %960 = vmatprep.subr.bf16.mxu1 %v1020_v3 }
 0x64c   :  { %v905_v2 = vpop.f32.mrf.mxu0 }
 0x64e   :  { %v192_v4 = vpop.f32.mrf.mxu0 }
 0x6b4   :  { %v412_v5 = vpop.f32.mrf.mxu1 }
 0x6b5   :  { %v418_v7 = vadd.f32 %v412_v5, %v192_v4 }
 0x6b6   :  { %v934_v8 = vpop.f32.mrf.mxu1 }
 0x6b7   :  { %995 = vtanh.f32 %v418_v7 }
 0x6b8   :  { %v415_v10 = vpop.f32.mrf.mxu1 }
 0x6ba   :  { %v935_v11 = vpop.f32.mrf.mxu1 }
 0x6c4   :  { %v996_v12 = vpop.eup %995 }
 0x6c5   :  { %v420_v13 = vmul.f32 %v996_v12, %v1116_v27 }
 0x6c7   :  { %v421_v15 = vadd.f32 %v420_v13, %v1118_v29 }
 0x6c9   :  { %424 = vrot.lane.b32.xlu0 %v421_v15, %s1023_s1  ;;  %v422_v20 = vmul.f32 %v421_v15, %v364_v55 }
 0x73b   :  { %v425_v16 = vpop.permute.xlu0 %424 }
 0x73c   :  { %v427_v17 = vmul.f32 %v425_v16, %v421_v15 }
 0x73e   :  { %429 = vrot.lane.b32.xlu1 %v427_v17, %s1024_s10 }
 0x742   :  { %45 = vperm.xlu1 %984, %v26_v18  }
 0x746   :  { %51 = vperm.xlu1 %984, %v28_v19  }
 0x7b0   :  { %v430_v21 = vpop.permute.xlu1 %429 }
 0x7b1   :  { %v432_v22 = vadd.f32 %v430_v21, %v422_v20 }
 0x7b3   :  { %997 = vtanh.f32 %v432_v22 }
 0x7bd   :  { %v46_v23 = vpop.permute.xlu1 %45 }
 0x7be   :  { %vm60_vm11 = vcmp.eq.s32.totalorder %v46_v23, %v1102_v14 }
 0x7bf   :  { %v825_v24 = vsel %vm60_vm11, 1.0, %v1020_v3 }
 0x7c0   :  { %v998_v25 = vpop.eup %997  ;;  %906 = vmatprep.mubr.msk.f32.mxu0 %vm87_vm2, %v825_v24 }
 0x7c1   :  { %435 = vrot.lane.b32.xlu0 %v998_v25, %s1023_s1  ;;  %v52_v33 = vpop.permute.xlu1 %51 }
 0x7c2   :  { %vm62_vm12 = vcmp.eq.s32.totalorder %v52_v33, %v1102_v14 }
 0x7c3   :  { %v827_v36 = vsel %vm62_vm12, 1.0, %v1020_v3 }
 0x7c5   :  { %48 = vperm.xlu0 %983, %v27_v26  }
 0x7c9   :  { %54 = vperm.xlu0 %983, %v29_v28  }
 0x833   :  { %v436_v30 = vpop.permute.xlu0 %435 }
 0x834   :  { %v1186_v31 = vmul.f32 %v436_v30, %v421_v15 }
 0x836   :  { %v439_v32 = vpack.c.bf16 %v1186_v31, %v1186_v31 }
 0x838   :  { %441 = vrot.lane.b32.xlu1 %v439_v32, %s1024_s10 }
 0x840   :  { %v49_v34 = vpop.permute.xlu0 %48 }
 0x841   :  { %vm61_vm13 = vcmp.eq.s32.totalorder %v49_v34, %v1102_v14 }
 0x842   :  { %v826_v35 = vsel %vm61_vm13, 1.0, %v1020_v3 }
 0x843   :  { %907 = vmatmul.mubr.msk.f32.gmra.mxu0 %vm87_vm2, %v826_v35 }
 0x844   :  { %909 = vmatprep.mubr.msk.f32.mxu0 %vm87_vm2, %v827_v36  ;;  %v55_v37 = vpop.permute.xlu0 %54 }
 0x845   :  { %vm63_vm14 = vcmp.eq.s32.totalorder %v55_v37, %v1102_v14 }
 0x846   :  { %v828_v38 = vsel %vm63_vm14, 1.0, %v1020_v3 }
 0x847   :  { %910 = vmatmul.mubr.msk.f32.gmra.mxu0 %vm87_vm2, %v828_v38 }
 0x848   :  { %940 = vmatprep.mubr.msk.bf16.mxu0 %vm1021_vm1, %v1020_v3 }
 0x8aa   :  { %v442_v40 = vpop.permute.xlu1 %441 }
 0x8ab   :  { %941 = vmatmul.mubr.msk.bf16.vlgmr.msra.gmra.mxu0 %vm238_vm8, %v442_v40 }
 0x8ac   :  { %953 = vmatpush3.bf16.msra.mxu0 %v1067_v6  ;;  %956 = vmatprep.mubr.msk.bf16.mxu0 %vm1021_vm1, %v1020_v3 }
 0x8ad   :  { %954 = vmatprep.subr.bf16.mxu0 %v1020_v3 }
 0x8b0   :  { %955 = vmatpush3.bf16.msra.mxu0 %v1081_v9 }
 0x8b1   :  { %968 = vmatprep.subr.bf16.mxu0 %v1020_v3 }
 0x903   :  { %v1209_v14 = vpop.f32.mrf.mxu0 }
 0x905   :  { %v202_v41 = vpop.f32.mrf.mxu0 }
 0x907   :  { %v1211_v42 = vpop.f32.mrf.mxu0 }
 0x909   :  { %v1213_v43 = vpop.f32.mrf.mxu0 }
 0x96b   :  { %v480_v44 = vpop.f32.mrf.mxu0 }
 0x96c   :  { %v486_v45 = vadd.f32 %v905_v2, %v480_v44 }
 0x96d   :  { %v942_v46 = vpop.f32.mrf.mxu0 }
 0x96e   :  { %999 = vtanh.f32 %v486_v45 }
 0x96f   :  { %v483_v47 = vpop.f32.mrf.mxu0 }
 0x971   :  { %v943_v48 = vpop.f32.mrf.mxu0 }
 0x97b   :  { %v1000_v49 = vpop.eup %999 }
 0x97c   :  { %v488_v50 = vmul.f32 %v1000_v49, %v1116_v27 }
 0x97e   :  { %v489_v51 = vadd.f32 %v488_v50, %v1118_v29 }
 0x980   :  { %492 = vrot.lane.b32.xlu0 %v489_v51, %s1023_s1  ;;  %v490_v54 = vmul.f32 %v489_v51, %v432_v22 }
 0x9f2   :  { %v493_v52 = vpop.permute.xlu0 %492 }
 0x9f3   :  { %v495_v53 = vmul.f32 %v493_v52, %v489_v51 }
 0x9f5   :  { %497 = vrot.lane.b32.xlu1 %v495_v53, %s1024_s10 }
 0xa67   :  { %v498_v55 = vpop.permute.xlu1 %497 }
 0xa68   :  { %v500_v56 = vadd.f32 %v498_v55, %v490_v54 }
 0xa6a   :  { %1001 = vtanh.f32 %v500_v56 }
 0xa77   :  { %v1002_v57 = vpop.eup %1001 }
 0xa78   :  { %503 = vrot.lane.b32.xlu0 %v1002_v57, %s1023_s1 }
 0xaea   :  { %v504_v58 = vpop.permute.xlu0 %503 }
 0xaeb   :  { %v1220_v59 = vmul.f32 %v504_v58, %v489_v51 }
 0xaed   :  { %v507_v60 = vpack.c.bf16 %v1220_v59, %v1220_v59 }
 0xaef   :  { %509 = vrot.lane.b32.xlu1 %v507_v60, %s1024_s10 }
 0xb61   :  { %v510_v62 = vpop.permute.xlu1 %509 }
 0xb62   :  { %949 = vmatmul.mubr.msk.bf16.vlgmr.msra.gmra.mxu1 %vm238_vm8, %v510_v62 }
 0xb63   :  { %961 = vmatpush3.bf16.msra.mxu1 %v1067_v6  ;;  %964 = vmatprep.mubr.msk.bf16.mxu1 %vm1021_vm1, %v1020_v3 }
 0xb64   :  { %962 = vmatprep.subr.bf16.mxu1 %v1020_v3 }
 0xb67   :  { %963 = vmatpush3.bf16.msra.mxu1 %v1081_v9 }
 0xc22   :  { %v548_v63 = vpop.f32.mrf.mxu1 }
 0xc23   :  { %v554_v0 = vadd.f32 %v548_v63, %v202_v41 }
 0xc24   :  { %v950_v1 = vpop.f32.mrf.mxu1 }
 0xc25   :  { %1003 = vtanh.f32 %v554_v0 }
 0xc26   :  { %v551_v2 = vpop.f32.mrf.mxu1 }
 0xc28   :  { %v951_v4 = vpop.f32.mrf.mxu1 }
 0xc32   :  { %v1004_v5 = vpop.eup %1003 }
 0xc33   :  { %v556_v7 = vmul.f32 %v1004_v5, %v1116_v27 }
 0xc35   :  { %v557_v8 = vadd.f32 %v556_v7, %v1118_v29 }
 0xc37   :  { %560 = vrot.lane.b32.xlu0 %v557_v8, %s1023_s1  ;;  %v558_v12 = vmul.f32 %v557_v8, %v500_v56 }
 0xca9   :  { %v561_v10 = vpop.permute.xlu0 %560 }
 0xcaa   :  { %v563_v11 = vmul.f32 %v561_v10, %v557_v8 }
 0xcac   :  { %565 = vrot.lane.b32.xlu1 %v563_v11, %s1024_s10 }
 0xd1e   :  { %v566_v13 = vpop.permute.xlu1 %565 }
 0xd1f   :  { %v568_v15 = vadd.f32 %v566_v13, %v558_v12 }
 0xd21   :  { %1005 = vtanh.f32 %v568_v15 }
 0xd2e   :  { %v1006_v16 = vpop.eup %1005 }
 0xd2f   :  { %571 = vrot.lane.b32.xlu0 %v1006_v16, %s1023_s1 }
 0xda1   :  { %v572_v17 = vpop.permute.xlu0 %571 }
 0xda2   :  { %v1236_v18 = vmul.f32 %v572_v17, %v557_v8 }
 0xda4   :  { %v575_v19 = vpack.c.bf16 %v1236_v18, %v1236_v18 }
 0xda6   :  { %577 = vrot.lane.b32.xlu1 %v575_v19, %s1024_s10 }
 0xe18   :  { %v578_v20 = vpop.permute.xlu1 %577 }
 0xe19   :  { %957 = vmatmul.mubr.msk.bf16.vlgmr.msra.gmra.mxu0 %vm238_vm8, %v578_v20 }
 0xe1a   :  { %969 = vmatpush3.bf16.msra.mxu0 %v1067_v6  ;;  %972 = vmatprep.mubr.msk.bf16.mxu0 %vm1021_vm1, %v1020_v3 }
 0xe1b   :  { %970 = vmatprep.subr.bf16.mxu0 %v1020_v3 }
 0xe1e   :  { %971 = vmatpush3.bf16.msra.mxu0 %v1081_v9 }
 0xed9   :  { %v616_v21 = vpop.f32.mrf.mxu0 }
 0xeda   :  { %v622_v22 = vadd.f32 %v1209_v14, %v616_v21  ;;  %v812_v21 = vld [vmem:[%s1299_s3 + $0x8] sm:$0xff] }
 0xedb   :  { %v958_v23 = vpop.f32.mrf.mxu0 }
 0xedc   :  { %1007 = vtanh.f32 %v622_v22 }
 0xedd   :  { %v619_v24 = vpop.f32.mrf.mxu0 }
 0xedf   :  { %v959_v25 = vpop.f32.mrf.mxu0 }
 0xee9   :  { %v1008_v26 = vpop.eup %1007 }
 0xeea   :  { %v624_v28 = vmul.f32 %v1008_v26, %v1116_v27 }
 0xeec   :  { %v625_v30 = vadd.f32 %v624_v28, %v1118_v29 }
 0xeee   :  { %628 = vrot.lane.b32.xlu0 %v625_v30, %s1023_s1  ;;  %v626_v3 = vmul.f32 %v625_v30, %v568_v15 }
 0xf60   :  { %v629_v6 = vpop.permute.xlu0 %628 }
 0xf61   :  { %v631_v32 = vmul.f32 %v629_v6, %v625_v30 }
 0xf63   :  { %633 = vrot.lane.b32.xlu1 %v631_v32, %s1024_s10 }
 0xfd5   :  { %v634_v9 = vpop.permute.xlu1 %633 }
 0xfd6   :  { %v636_v33 = vadd.f32 %v634_v9, %v626_v3 }
 0xfd8   :  { %1009 = vtanh.f32 %v636_v33 }
 0xfe5   :  { %v1010_v34 = vpop.eup %1009 }
 0xfe6   :  { %639 = vrot.lane.b32.xlu0 %v1010_v34, %s1023_s1 }
0x1058   :  { %v640_v35 = vpop.permute.xlu0 %639 }
0x1059   :  { %v642_v36 = vmul.f32 %v640_v35, %v625_v30 }
0x105b   :  { %v643_v37 = vpack.c.bf16 %v642_v36, %v642_v36 }
0x105d   :  { %645 = vrot.lane.b32.xlu1 %v643_v37, %s1024_s10 }
0x10cf   :  { %v646_v38 = vpop.permute.xlu1 %645 }
0x10d0   :  { %965 = vmatmul.mubr.msk.bf16.vlgmr.msra.gmra.mxu1 %vm238_vm8, %v646_v38 }
0x1190   :  { %v684_v40 = vpop.f32.mrf.mxu1 }
0x1191   :  { %v690_v14 = vadd.f32 %v684_v40, %v1213_v43 }
0x1192   :  { %v966_v41 = vpop.f32.mrf.mxu1 }
0x1193   :  { %1011 = vtanh.f32 %v690_v14 }
0x1194   :  { %v687_v44 = vpop.f32.mrf.mxu1 }
0x1196   :  { %v967_v45 = vpop.f32.mrf.mxu1 }
0x11a0   :  { %v1012_v46 = vpop.eup %1011 }
0x11a1   :  { %v692_v47 = vmul.f32 %v1012_v46, %v1116_v27 }
0x11a3   :  { %v693_v48 = vadd.f32 %v692_v47, %v1118_v29 }
0x11a5   :  { %696 = vrot.lane.b32.xlu0 %v693_v48, %s1023_s1  ;;  %v694_v51 = vmul.f32 %v693_v48, %v636_v33 }
0x1217   :  { %v697_v49 = vpop.permute.xlu0 %696 }
0x1218   :  { %v699_v50 = vmul.f32 %v697_v49, %v693_v48 }
0x121a   :  { %701 = vrot.lane.b32.xlu1 %v699_v50, %s1024_s10 }
0x128c   :  { %v702_v52 = vpop.permute.xlu1 %701 }
0x128d   :  { %v704_v53 = vadd.f32 %v702_v52, %v694_v51 }
0x128f   :  { %1013 = vtanh.f32 %v704_v53 }
0x129c   :  { %v1014_v43 = vpop.eup %1013 }
0x129d   :  { %707 = vrot.lane.b32.xlu0 %v1014_v43, %s1023_s1 }
0x130f   :  { %v708_v54 = vpop.permute.xlu0 %707 }
0x1310   :  { %v710_v55 = vmul.f32 %v708_v54, %v693_v48 }
0x1312   :  { %v711_v56 = vpack.c.bf16 %v710_v55, %v710_v55 }
0x1314   :  { %713 = vrot.lane.b32.xlu1 %v711_v56, %s1024_s10 }
0x1386   :  { %v714_v57 = vpop.permute.xlu1 %713 }
0x1387   :  { %973 = vmatmul.mubr.msk.bf16.vlgmr.msra.gmra.mxu0 %vm238_vm8, %v714_v57 }
0x1447   :  { %v752_v58 = vpop.f32.mrf.mxu0 }
0x1448   :  { %v758_v60 = vadd.f32 %v1211_v42, %v752_v58 }
0x1449   :  { %v974_v62 = vpop.f32.mrf.mxu0 }
0x144a   :  { %1015 = vtanh.f32 %v758_v60 }
0x144b   :  { %v755_v63 = vpop.f32.mrf.mxu0 }
0x144d   :  { %v975_v0 = vpop.f32.mrf.mxu0 }
0x1457   :  { %v1016_v1 = vpop.eup %1015 }
0x1458   :  { %v760_v2 = vmul.f32 %v1016_v1, %v1116_v27 }
0x145a   :  { %v761_v4 = vadd.f32 %v760_v2, %v1118_v29 }
0x145c   :  { %764 = vrot.lane.b32.xlu0 %v761_v4, %s1023_s1  ;;  %v762_v27 = vmul.f32 %v761_v4, %v704_v53 }
0x1460   :  { %784 = vrot.lane.b32.xlu0 %v1151_v61, %s1023_s1 }
0x1464   :  { %796 = vrot.lane.b32.xlu0 %v642_v36, %s1023_s1 }
0x14ce   :  { %v765_v5 = vpop.permute.xlu0 %764 }
0x14cf   :  { %v767_v7 = vmul.f32 %v765_v5, %v761_v4 }
0x14d1   :  { %769 = vrot.lane.b32.xlu1 %v767_v7, %s1024_s10 }
0x14d2   :  { %v785_v10 = vpop.permute.xlu0 %784 }
0x14d5   :  { %780 = vrot.lane.b32.xlu1 %v1125_v39, %s1024_s10  ;;  %v811_v39 = vld [vmem:[%s1299_s3] sm:$0xff] }
0x14d6   :  { %v797_v17 = vpop.permute.xlu0 %796 }
0x14d9   :  { %792 = vrot.lane.b32.xlu1 %v1236_v18, %s1024_s10 }
0x14dd   :  { %788 = vrot.lane.b32.xlu1 %v1186_v31, %s1025_s0 }
0x1543   :  { %v770_v29 = vpop.permute.xlu1 %769 }
0x1544   :  { %v772_v42 = vadd.f32 %v770_v29, %v762_v27 }
0x1546   :  { %1017 = vtanh.f32 %v772_v42 }
0x1547   :  { %v781_v61 = vpop.permute.xlu1 %780 }
0x1548   :  { %v803_v11 = vsel %vm238_vm8, %v781_v61, %v785_v10 }
0x154b   :  { %v793_v8 = vpop.permute.xlu1 %792 }
0x154c   :  { %v808_v19 = vsel %vm238_vm8, %v793_v8, %v797_v17 }
0x154f   :  { %v789_v12 = vpop.permute.xlu1 %788 }
0x1550   :  { %v805_v13 = vsel %vm804_vm15, %v803_v11, %v789_v12 }
0x1551   :  { %v807_v31 = vsel %vm806_vm0, %v805_v13, %v1220_v59 }
0x1552   :  { %v813_v15 = vmul.f32 %v811_v39, %v807_v31 }
0x1553   :  { %v1018_v16 = vpop.eup %1017 }
0x1554   :  { %815 = vst [vmem:[%s1300_s4] sm:$0xff] %v813_v15  ;;  %775 = vrot.lane.b32.xlu0 %v1018_v16, %s1023_s1 }
0x1558   :  { %800 = vrot.lane.b32.xlu0 %v710_v55, %s1025_s0 }
0x15c6   :  { %v776_v18 = vpop.permute.xlu0 %775 }
0x15c7   :  { %v778_v20 = vmul.f32 %v776_v18, %v761_v4 }
0x15ca   :  { %v801_v22 = vpop.permute.xlu0 %800 }
0x15cb   :  { %v809_v59 = vsel %vm804_vm15, %v808_v19, %v801_v22 }
0x15cc   :  { %v810_v23 = vsel %vm806_vm0, %v809_v59, %v778_v20 }
0x15cd   :  { %v814_v24 = vmul.f32 %v812_v21, %v810_v23 }
0x15cf   :  { %816 = vst [vmem:[%s1300_s4 + $0x8] sm:$0xff] %v814_v24 }

</bundles_post_ra>
